<compile_context>
chip_gen: v6e
topology: v6e:2x2x1
jax: 0.10.0
libtpu: 0.0.40
codegen_flags: <defaults>
</compile_context>

<pallas_src>
import functools
import math

import jax
import jax.numpy as jnp
from jax.experimental import pallas as pl
from jax.experimental.pallas import tpu as pltpu


# ---------------------------------------------------------------------------
# helpers
# ---------------------------------------------------------------------------
def _round_up(x, m):
    return ((x + m - 1) // m) * m


def _pick_tile(dim, max_tile, align=128):
    """Largest multiple of `align` that divides `dim` and is <= max_tile."""
    best = min(align, dim)
    t = align
    while t <= min(max_tile, dim):
        if dim % t == 0:
            best = t
        t += align
    return best


def _vmem_budget_bytes(frac=0.65, fallback=64 * 1024 * 1024):
    """Generation-aware scoped-VMEM budget (v7x: 64 MiB, v5e/v6e: 128 MiB)."""
    cap = None
    try:
        info = pltpu.get_tpu_info()
        cap = getattr(info, "vmem_capacity_bytes", None)
    except Exception:
        cap = None
    if not cap:
        cap = fallback
    return min(int(cap * frac), 96 * 1024 * 1024)


@functools.lru_cache(maxsize=None)
def _single_buffer_supported():
    """Probe whether pipeline_mode=pl.Buffered(1) lowers on this jax/libtpu."""
    try:
        def k(x_ref, o_ref):
            o_ref[...] = x_ref[...]

        x = jnp.zeros((8, 128), jnp.float32)
        out = pl.pallas_call(
            k,
            out_shape=jax.ShapeDtypeStruct((8, 128), jnp.float32),
            grid=(1,),
            in_specs=[pl.BlockSpec((8, 128), lambda i: (0, 0),
                                   pipeline_mode=pl.Buffered(1))],
            out_specs=pl.BlockSpec((8, 128), lambda i: (0, 0)),
        )(x)
        jax.block_until_ready(out)
        return True
    except Exception:
        return False


def _gelu(x, approximate=True):
    if approximate:
        # tanh-approx GELU -> EUP tanh (torch GELU(approximate='tanh'))
        return jax.nn.gelu(x, approximate=True)
    # exact erf form == torch.nn.GELU() default (VPU polynomial; compat only)
    return 0.5 * x * (1.0 + jax.lax.erf(x * (1.0 / math.sqrt(2.0))))


# ---------------------------------------------------------------------------
# Per-layer tiled Linear (+ bias + optional GELU) — canonical M/N/K tiling
# ---------------------------------------------------------------------------
def _tiled_linear_kernel(x_ref, w_ref, b_ref, o_ref, acc_ref, *,
                         apply_act, approximate_gelu):
    k = pl.program_id(2)

    @pl.when(k == 0)
    def _():
        acc_ref[...] = jnp.zeros_like(acc_ref)

    acc_ref[...] += jnp.dot(x_ref[...], w_ref[...],
                            preferred_element_type=jnp.float32)

    @pl.when(k == pl.num_programs(2) - 1)
    def _():
        y = acc_ref[...] + b_ref[...].astype(jnp.float32)
        if apply_act:
            y = _gelu(y, approximate_gelu)
        o_ref[...] = y.astype(o_ref.dtype)


def _linear_tiled_padded(xp, wp, bp, *, apply_act, approximate_gelu,
                         out_dtype, tm, vmem_limit):
    """y = xp @ wp + bp on pre-padded arrays; output stays padded."""
    Mp, Kp = xp.shape
    Kp2, Np = wp.shape
    assert Kp == Kp2 and Mp % tm == 0

    tn = _pick_tile(Np, 512)
    tk = _pick_tile(Kp, 1024 if xp.dtype == jnp.bfloat16 else 512)
    gm, gn, gk = Mp // tm, Np // tn, Kp // tk

    kernel = functools.partial(_tiled_linear_kernel, apply_act=apply_act,
                               approximate_gelu=approximate_gelu)

    flops = 2 * Mp * Kp * Np
    # Actual streaming: x re-read per N tile, W/b re-read per M tile.
    bytes_accessed = (xp.size * xp.dtype.itemsize * gn
                      + wp.size * wp.dtype.itemsize * gm
                      + bp.size * bp.dtype.itemsize * gm
                      + Mp * Np * jnp.dtype(out_dtype).itemsize)
    transcendentals = Mp * Np if apply_act else 0

    return pl.pallas_call(
        kernel,
        out_shape=jax.ShapeDtypeStruct((Mp, Np), out_dtype),
        grid_spec=pltpu.PrefetchScalarGridSpec(
            num_scalar_prefetch=0,
            grid=(gm, gn, gk),
            in_specs=[
                pl.BlockSpec((tm, tk), lambda i, j, k: (i, k)),
                pl.BlockSpec((tk, tn), lambda i, j, k: (k, j)),
                pl.BlockSpec((1, tn), lambda i, j, k: (0, j)),
            ],
            out_specs=pl.BlockSpec((tm, tn), lambda i, j, k: (i, j)),
            scratch_shapes=[pltpu.VMEM((tm, tn), jnp.float32)],
        ),
        compiler_params=pltpu.CompilerParams(
            dimension_semantics=("parallel", "parallel", "arbitrary"),
            vmem_limit_bytes=vmem_limit),
        cost_estimate=pl.CostEstimate(flops=flops,
                                      transcendentals=transcendentals,
                                      bytes_accessed=bytes_accessed),
    )(xp, wp, bp)


# ---------------------------------------------------------------------------
# Fused MLP: single pallas_call, activations stay resident in VMEM per tile
# ---------------------------------------------------------------------------
def _fused_mlp_kernel(*refs, num_layers, approximate_gelu, compute_dtype):
    # refs = [x, w0, b0, w1, b1, ..., w_{L-1}, b_{L-1}, o]
    x_ref = refs[0]
    o_ref = refs[1 + 2 * num_layers]
    h = x_ref[...]
    for l in range(num_layers):          # unrolled: num_layers is static
        w_ref = refs[1 + 2 * l]
        b_ref = refs[2 + 2 * l]
        y = jnp.dot(h.astype(compute_dtype), w_ref[...],
                    preferred_element_type=jnp.float32)
        y = y + b_ref[...].astype(jnp.float32)
        if l != num_layers - 1:
            y = _gelu(y, approximate_gelu)
        h = y
    o_ref[...] = h.astype(o_ref.dtype)


def _fused_vmem_bytes(dims_p, tm, compute_itemsize, out_itemsize,
                      weight_buffers=2):
    """VMEM estimate matching the specs actually emitted."""
    n = len(dims_p) - 1
    w = sum(dims_p[l] * dims_p[l + 1] for l in range(n)) * compute_itemsize
    w *= weight_buffers
    b = sum(dims_p[1:]) * 4 * weight_buffers
    x = 2 * tm * dims_p[0] * compute_itemsize          # double-buffered input
    o = 2 * tm * dims_p[-1] * out_itemsize             # double-buffered output
    # live per-layer intermediates: f32 dot result + f32 epilogue value +
    # compute-dtype activation copy feeding the next matmul
    inter = tm * max(dims_p) * (4 + 4 + compute_itemsize)
    return w + b + x + o + inter


def _fused_mlp_call(xp, padded_params, dims_p, *, tm, out_dtype, compute_dtype,
                    approximate_gelu, vmem_limit, single_buffer_weights):
    Mp = xp.shape[0]
    num_layers = len(padded_params)

    w_mode = {}
    if single_buffer_weights:
        # Weights/biases are grid-invariant: a single VMEM buffer suffices.
        w_mode = dict(pipeline_mode=pl.Buffered(1))

    in_arrays = [xp]
    in_specs = [pl.BlockSpec((tm, dims_p[0]), lambda i: (i, 0))]
    for l, (wp, bp) in enumerate(padded_params):
        dp_in, dp_out = dims_p[l], dims_p[l + 1]
        in_arrays += [wp, bp]
        in_specs += [pl.BlockSpec((dp_in, dp_out), lambda i: (0, 0), **w_mode),
                     pl.BlockSpec((1, dp_out), lambda i: (0, 0), **w_mode)]

    flops = sum(2 * Mp * dims_p[l] * dims_p[l + 1] for l in range(num_layers))
    transcendentals = Mp * sum(dims_p[1:-1]) if num_layers > 1 else 0
    bytes_accessed = (sum(a.size * a.dtype.itemsize for a in in_arrays)
                      + Mp * dims_p[-1] * jnp.dtype(out_dtype).itemsize)

    kernel = functools.partial(_fused_mlp_kernel, num_layers=num_layers,
                               approximate_gelu=approximate_gelu,
                               compute_dtype=compute_dtype)

    return pl.pallas_call(
        kernel,
        out_shape=jax.ShapeDtypeStruct((Mp, dims_p[-1]), out_dtype),
        grid_spec=pltpu.PrefetchScalarGridSpec(
            num_scalar_prefetch=0,
            grid=(Mp // tm,),
            in_specs=in_specs,
            out_specs=pl.BlockSpec((tm, dims_p[-1]), lambda i: (i, 0)),
        ),
        compiler_params=pltpu.CompilerParams(
            dimension_semantics=("parallel",),
            vmem_limit_bytes=vmem_limit),
        cost_estimate=pl.CostEstimate(flops=flops,
                                      transcendentals=transcendentals,
                                      bytes_accessed=bytes_accessed),
    )(*in_arrays)


# ---------------------------------------------------------------------------
# MLPBlock: parameters padded & cached once; forward picks fused vs tiled path
# ---------------------------------------------------------------------------
def init_mlp_params(key, input_dim, output_dim, hidden_dim, num_layers,
                    dtype=jnp.float32):
    """torch.nn.Linear-style init; weights stored pre-transposed as (in, out)."""
    assert num_layers >= 2
    dims = [input_dim] + [hidden_dim] * (num_layers - 1) + [output_dim]
    params = []
    for i in range(num_layers):
        fan_in, fan_out = dims[i], dims[i + 1]
        key, kw, kb = jax.random.split(key, 3)
        bound = 1.0 / math.sqrt(fan_in)
        w = jax.random.uniform(kw, (fan_in, fan_out), dtype, -bound, bound)
        b = jax.random.uniform(kb, (fan_out,), dtype, -bound, bound)
        params.append((w, b))
    return params


class MLPBlockPallas:
    """Inference-mode MLPBlock. Pads/casts weights once at construction."""

    def __init__(self, params, *, compute_dtype=None, approximate_gelu=True,
                 fuse=None):
        if compute_dtype is None:
            compute_dtype = jnp.bfloat16        # perf default: bf16 MXU inputs
        self.compute_dtype = jnp.dtype(compute_dtype)
        self.approximate_gelu = approximate_gelu
        self.num_layers = len(params)
        self._fuse = fuse

        input_dim = params[0][0].shape[0]
        self.dims = [input_dim] + [w.shape[1] for (w, _) in params]
        self.dims_p = [_round_up(d, 128) for d in self.dims]   # lane-dense pad

        # Pre-pad + cast ONCE (no per-forward jnp.pad of weights).
        self.padded_params = []
        for l, (w, b) in enumerate(params):
            dp_in, dp_out = self.dims_p[l], self.dims_p[l + 1]
            wp = jnp.pad(w.astype(self.compute_dtype),
                         ((0, dp_in - w.shape[0]), (0, dp_out - w.shape[1])))
            bp = jnp.pad(b.astype(jnp.float32),
                         (0, dp_out - b.shape[0])).reshape(1, dp_out)
            self.padded_params.append((wp, bp))

        self.vmem_budget = _vmem_budget_bytes()

    def __call__(self, x):
        M, Din = x.shape
        assert Din == self.dims[0]
        out_dtype = x.dtype
        out_dim = self.dims[-1]

        # ---- fused-path batch tile: expose >= 2 grid steps when possible so
        # both v7x TensorCores get work (harmless on 1-TC v5e/v6e). ----
        tm_f = min(512, _round_up(M, 8))
        if M > 8:
            tm_f = min(tm_f, max(8, _round_up((M + 1) // 2, 8)))
        Mp_f = _round_up(M, tm_f)

        single_buf = _single_buffer_supported()
        fuse = self._fuse
        if fuse is None:
            need = _fused_vmem_bytes(self.dims_p, tm_f,
                                     self.compute_dtype.itemsize,
                                     jnp.dtype(out_dtype).itemsize,
                                     weight_buffers=1 if single_buf else 2)
            fuse = need <= self.vmem_budget

        if fuse:
            xp = jnp.pad(x.astype(self.compute_dtype),
                         ((0, Mp_f - M), (0, self.dims_p[0] - Din)))
            out = _fused_mlp_call(
                xp, self.padded_params, self.dims_p,
                tm=tm_f, out_dtype=out_dtype, compute_dtype=self.compute_dtype,
                approximate_gelu=self.approximate_gelu,
                vmem_limit=self.vmem_budget,
                single_buffer_weights=single_buf)
            return out[:M, :out_dim]

        # ---- per-layer tiled fallback: carry the PADDED activation between
        # layers (padded weight rows/cols and biases are zero -> exact). ----
        # TODO(synk): emit_pipeline "resident activation, streamed weights"
        # middle path for very large hidden dims.
        tm_t = min(512, _round_up(M, 8))
        Mp_t = _round_up(M, tm_t)
        h = jnp.pad(x.astype(self.compute_dtype),
                    ((0, Mp_t - M), (0, self.dims_p[0] - Din)))
        for idx, (wp, bp) in enumerate(self.padded_params):
            last = idx == self.num_layers - 1
            h = _linear_tiled_padded(
                h, wp, bp, apply_act=not last,
                approximate_gelu=self.approximate_gelu,
                out_dtype=out_dtype if last else self.compute_dtype,
                tm=tm_t, vmem_limit=self.vmem_budget)
        return h[:M, :out_dim]


def mlp_block_forward(x, params, **kwargs):
    """Convenience one-shot wrapper (prefer constructing MLPBlockPallas once)."""
    return MLPBlockPallas(params, **kwargs)(x)


# Pure-JAX reference for correctness checking
def mlp_block_ref(x, params, approximate_gelu=True):
    n = len(params)
    h = x
    for idx, (w, b) in enumerate(params):
        h = h @ w + b
        if idx != n - 1:
            h = _gelu(h, approximate_gelu)
    return h


if __name__ == "__main__":
    # Small shapes consistent with the module's forward: x is (batch, input_dim).
    batch = 8
    input_dim = 16
    hidden_dim = 32
    output_dim = 8
    num_layers = 3      # Linear -> act -> drop -> Linear -> act -> drop -> Linear

    key = jax.random.PRNGKey(0)
    key, kx = jax.random.split(key)
    x = jax.random.normal(kx, (batch, input_dim), dtype=jnp.float32)
    params = init_mlp_params(key, input_dim, output_dim, hidden_dim, num_layers)

    ref = mlp_block_ref(x, params)

    # 1) fused-MLP path (auto-selected at these sizes), f32 MXU inputs
    mlp_f32 = MLPBlockPallas(params, compute_dtype=jnp.float32)
    out_fused = jax.block_until_ready(mlp_f32(x))
    assert out_fused.shape == (batch, output_dim), out_fused.shape
    assert jnp.allclose(out_fused, ref, atol=1e-5, rtol=1e-5), \
        float(jnp.max(jnp.abs(out_fused - ref)))

    # 2) per-layer tiled-matmul path (forced), f32 MXU inputs
    mlp_f32_tiled = MLPBlockPallas(params, compute_dtype=jnp.float32, fuse=False)
    out_tiled = jax.block_until_ready(mlp_f32_tiled(x))
    assert jnp.allclose(out_tiled, ref, atol=1e-5, rtol=1e-5), \
        float(jnp.max(jnp.abs(out_tiled - ref)))

    # 3) default config: bf16 MXU inputs, f32 accumulation (loosened tolerance)
    mlp_default = MLPBlockPallas(params)
    out_bf16 = jax.block_until_ready(mlp_default(x))
    assert jnp.allclose(out_bf16.astype(jnp.float32), ref,
                        atol=1e-1, rtol=5e-2), \
        float(jnp.max(jnp.abs(out_bf16.astype(jnp.float32) - ref)))

    print("KERNEL_OK")
</pallas_src>

<mosaic_0001>
module attributes {stable_mosaic.version = 11 : i64} {
  func.func @k(%arg0: i32, %arg1: memref<8x128xf32, #tpu.memory_space<vmem>>, %arg2: memref<8x128xf32, #tpu.memory_space<vmem>>) attributes {dimension_semantics = [#tpu.dimension_semantics<arbitrary>], iteration_bounds = array<i64: 1>, scalar_prefetch = 0 : i64, scratch_operands = 0 : i64, tpu.core_type = #tpu.core_type<tc>, window_params = [{pipeline_mode = #tpu.pipeline_mode<synchronous>, transform_indices = @transform_0, window_bounds = array<i64: 8, 128>}, {pipeline_mode = #tpu.pipeline_mode<synchronous>, transform_indices = @transform_1, window_bounds = array<i64: 8, 128>}]} {
    %c0 = arith.constant 0 : index
    %c0_0 = arith.constant 0 : index
    %0 = vector.load %arg1[%c0, %c0_0] : memref<8x128xf32, #tpu.memory_space<vmem>>, vector<8x128xf32>
    %c0_1 = arith.constant 0 : index
    %c0_2 = arith.constant 0 : index
    %1 = vector.load %arg2[%c0_1, %c0_2] : memref<8x128xf32, #tpu.memory_space<vmem>>, vector<8x128xf32>
    tpu.vector_store %arg2[%c0_1, %c0_2], %0 {strides = array<i32>} : memref<8x128xf32, #tpu.memory_space<vmem>>, vector<8x128xf32>,
    return
  }
  func.func @transform_0(%arg0: i32) -> (i32, i32) {
    %c0_i32 = arith.constant 0 : i32
    %c0_i32_0 = arith.constant 0 : i32
    %c0_i32_1 = arith.constant 0 : i32
    return %c0_i32, %c0_i32_0 : i32, i32
  }
  func.func @transform_1(%arg0: i32) -> (i32, i32) {
    %c0_i32 = arith.constant 0 : i32
    %c0_i32_0 = arith.constant 0 : i32
    %c0_i32_1 = arith.constant 0 : i32
    return %c0_i32, %c0_i32_0 : i32, i32
  }
}

module attributes {stable_mosaic.version = 11 : i64} {
  func.func @_fused_mlp_kernel(%arg0: i32, %arg1: memref<8x128xf32, #tpu.memory_space<vmem>>, %arg2: memref<128x128xf32, #tpu.memory_space<vmem>>, %arg3: memref<1x128xf32, #tpu.memory_space<vmem>>, %arg4: memref<128x128xf32, #tpu.memory_space<vmem>>, %arg5: memref<1x128xf32, #tpu.memory_space<vmem>>, %arg6: memref<128x128xf32, #tpu.memory_space<vmem>>, %arg7: memref<1x128xf32, #tpu.memory_space<vmem>>, %arg8: memref<8x128xf32, #tpu.memory_space<vmem>>) attributes {dimension_semantics = [#tpu.dimension_semantics<parallel>], iteration_bounds = array<i64: 1>, scalar_prefetch = 0 : i64, scratch_operands = 0 : i64, tpu.core_type = #tpu.core_type<tc>, window_params = [{transform_indices = @transform_0, window_bounds = array<i64: 8, 128>}, {pipeline_mode = #tpu.pipeline_mode<synchronous>, transform_indices = @transform_1, window_bounds = array<i64: 128, 128>}, {pipeline_mode = #tpu.pipeline_mode<synchronous>, transform_indices = @transform_2, window_bounds = array<i64: 1, 128>}, {pipeline_mode = #tpu.pipeline_mode<synchronous>, transform_indices = @transform_3, window_bounds = array<i64: 128, 128>}, {pipeline_mode = #tpu.pipeline_mode<synchronous>, transform_indices = @transform_4, window_bounds = array<i64: 1, 128>}, {pipeline_mode = #tpu.pipeline_mode<synchronous>, transform_indices = @transform_5, window_bounds = array<i64: 128, 128>}, {pipeline_mode = #tpu.pipeline_mode<synchronous>, transform_indices = @transform_6, window_bounds = array<i64: 1, 128>}, {transform_indices = @transform_7, window_bounds = array<i64: 8, 128>}]} {
    %c0 = arith.constant 0 : index
    %c0_0 = arith.constant 0 : index
    %0 = vector.load %arg1[%c0, %c0_0] : memref<8x128xf32, #tpu.memory_space<vmem>>, vector<8x128xf32>
    %c0_1 = arith.constant 0 : index
    %c0_2 = arith.constant 0 : index
    %1 = vector.load %arg2[%c0_1, %c0_2] : memref<128x128xf32, #tpu.memory_space<vmem>>, vector<128x128xf32>
    %cst = arith.constant dense<0.000000e+00> : vector<8x128xf32>
    %2 = tpu.matmul %0, %1, %cst {dimension_numbers = #tpu.dot_dimension_numbers<[1], [0], [0], [1], [0, 0, 1, 1], [], []>} : vector<8x128xf32>, vector<128x128xf32>, vector<8x128xf32> -> vector<8x128xf32>
    %c0_3 = arith.constant 0 : index
    %c0_4 = arith.constant 0 : index
    %3 = vector.load %arg3[%c0_3, %c0_4] : memref<1x128xf32, #tpu.memory_space<vmem>>, vector<1x128xf32>
    %4 = vector.broadcast %3 : vector<1x128xf32> to vector<8x128xf32>
    %5 = arith.addf %2, %4 : vector<8x128xf32>
    %6 = arith.mulf %5, %5 : vector<8x128xf32>
    %7 = arith.mulf %5, %6 : vector<8x128xf32>
    %cst_5 = arith.constant 4.471500e-02 : f32
    %8 = vector.broadcast %cst_5 : f32 to vector<8x128xf32>
    %9 = arith.mulf %8, %7 : vector<8x128xf32>
    %10 = arith.addf %5, %9 : vector<8x128xf32>
    %cst_6 = arith.constant 0.797884583 : f32
    %11 = vector.broadcast %cst_6 : f32 to vector<8x128xf32>
    %12 = arith.mulf %11, %10 : vector<8x128xf32>
    %13 = math.tanh %12 : vector<8x128xf32>
    %cst_7 = arith.constant 1.000000e+00 : f32
    %14 = vector.broadcast %cst_7 : f32 to vector<8x128xf32>
    %15 = arith.addf %14, %13 : vector<8x128xf32>
    %cst_8 = arith.constant 5.000000e-01 : f32
    %16 = vector.broadcast %cst_8 : f32 to vector<8x128xf32>
    %17 = arith.mulf %16, %15 : vector<8x128xf32>
    %18 = arith.mulf %5, %17 : vector<8x128xf32>
    %c0_9 = arith.constant 0 : index
    %c0_10 = arith.constant 0 : index
    %19 = vector.load %arg4[%c0_9, %c0_10] : memref<128x128xf32, #tpu.memory_space<vmem>>, vector<128x128xf32>
    %cst_11 = arith.constant dense<0.000000e+00> : vector<8x128xf32>
    %20 = tpu.matmul %18, %19, %cst_11 {dimension_numbers = #tpu.dot_dimension_numbers<[1], [0], [0], [1], [0, 0, 1, 1], [], []>} : vector<8x128xf32>, vector<128x128xf32>, vector<8x128xf32> -> vector<8x128xf32>
    %c0_12 = arith.constant 0 : index
    %c0_13 = arith.constant 0 : index
    %21 = vector.load %arg5[%c0_12, %c0_13] : memref<1x128xf32, #tpu.memory_space<vmem>>, vector<1x128xf32>
    %22 = vector.broadcast %21 : vector<1x128xf32> to vector<8x128xf32>
    %23 = arith.addf %20, %22 : vector<8x128xf32>
    %24 = arith.mulf %23, %23 : vector<8x128xf32>
    %25 = arith.mulf %23, %24 : vector<8x128xf32>
    %cst_14 = arith.constant 4.471500e-02 : f32
    %26 = vector.broadcast %cst_14 : f32 to vector<8x128xf32>
    %27 = arith.mulf %26, %25 : vector<8x128xf32>
    %28 = arith.addf %23, %27 : vector<8x128xf32>
    %cst_15 = arith.constant 0.797884583 : f32
    %29 = vector.broadcast %cst_15 : f32 to vector<8x128xf32>
    %30 = arith.mulf %29, %28 : vector<8x128xf32>
    %31 = math.tanh %30 : vector<8x128xf32>
    %cst_16 = arith.constant 1.000000e+00 : f32
    %32 = vector.broadcast %cst_16 : f32 to vector<8x128xf32>
    %33 = arith.addf %32, %31 : vector<8x128xf32>
    %cst_17 = arith.constant 5.000000e-01 : f32
    %34 = vector.broadcast %cst_17 : f32 to vector<8x128xf32>
    %35 = arith.mulf %34, %33 : vector<8x128xf32>
    %36 = arith.mulf %23, %35 : vector<8x128xf32>
    %c0_18 = arith.constant 0 : index
    %c0_19 = arith.constant 0 : index
    %37 = vector.load %arg6[%c0_18, %c0_19] : memref<128x128xf32, #tpu.memory_space<vmem>>, vector<128x128xf32>
    %cst_20 = arith.constant dense<0.000000e+00> : vector<8x128xf32>
    %38 = tpu.matmul %36, %37, %cst_20 {dimension_numbers = #tpu.dot_dimension_numbers<[1], [0], [0], [1], [0, 0, 1, 1], [], []>} : vector<8x128xf32>, vector<128x128xf32>, vector<8x128xf32> -> vector<8x128xf32>
    %c0_21 = arith.constant 0 : index
    %c0_22 = arith.constant 0 : index
    %39 = vector.load %arg7[%c0_21, %c0_22] : memref<1x128xf32, #tpu.memory_space<vmem>>, vector<1x128xf32>
    %40 = vector.broadcast %39 : vector<1x128xf32> to vector<8x128xf32>
    %41 = arith.addf %38, %40 : vector<8x128xf32>
    %c0_23 = arith.constant 0 : index
    %c0_24 = arith.constant 0 : index
    %42 = vector.load %arg8[%c0_23, %c0_24] : memref<8x128xf32, #tpu.memory_space<vmem>>, vector<8x128xf32>
    tpu.vector_store %arg8[%c0_23, %c0_24], %41 {strides = array<i32>} : memref<8x128xf32, #tpu.memory_space<vmem>>, vector<8x128xf32>,
    return
  }
  func.func @transform_0(%arg0: i32) -> (i32, i32) {
    %c0_i32 = arith.constant 0 : i32
    %c0_i32_0 = arith.constant 0 : i32
    return %arg0, %c0_i32 : i32, i32
  }
  func.func @transform_1(%arg0: i32) -> (i32, i32) {
    %c0_i32 = arith.constant 0 : i32
    %c0_i32_0 = arith.constant 0 : i32
    %c0_i32_1 = arith.constant 0 : i32
    return %c0_i32, %c0_i32_0 : i32, i32
  }
  func.func @transform_2(%arg0: i32) -> (i32, i32) {
    %c0_i32 = arith.constant 0 : i32
    %c0_i32_0 = arith.constant 0 : i32
    %c0_i32_1 = arith.constant 0 : i32
    return %c0_i32, %c0_i32_0 : i32, i32
  }
  func.func @transform_3(%arg0: i32) -> (i32, i32) {
    %c0_i32 = arith.constant 0 : i32
    %c0_i32_0 = arith.constant 0 : i32
    %c0_i32_1 = arith.constant 0 : i32
    return %c0_i32, %c0_i32_0 : i32, i32
  }
  func.func @transform_4(%arg0: i32) -> (i32, i32) {
    %c0_i32 = arith.constant 0 : i32
    %c0_i32_0 = arith.constant 0 : i32
    %c0_i32_1 = arith.constant 0 : i32
    return %c0_i32, %c0_i32_0 : i32, i32
  }
  func.func @transform_5(%arg0: i32) -> (i32, i32) {
    %c0_i32 = arith.constant 0 : i32
    %c0_i32_0 = arith.constant 0 : i32
    %c0_i32_1 = arith.constant 0 : i32
    return %c0_i32, %c0_i32_0 : i32, i32
  }
  func.func @transform_6(%arg0: i32) -> (i32, i32) {
    %c0_i32 = arith.constant 0 : i32
    %c0_i32_0 = arith.constant 0 : i32
    %c0_i32_1 = arith.constant 0 : i32
    return %c0_i32, %c0_i32_0 : i32, i32
  }
  func.func @transform_7(%arg0: i32) -> (i32, i32) {
    %c0_i32 = arith.constant 0 : i32
    %c0_i32_0 = arith.constant 0 : i32
    return %arg0, %c0_i32 : i32, i32
  }
}

</mosaic_0001>

<bundles_post_ra>
// kernel: tpu_custom_call.1
= control target key start
LH: loop header
LB: loop body
LE: loop exit
PB: predicated region body
PF: predicated region fallthrough
CT: control target
= control target key end

     0   :  { %6 = vsyncpa [#allocation3], 0  ;;  %s102_s0 = inlined_call_operand.hbm [shape: f32[8,128], index: 0, kind: input, shape index: {}]   ;;  %s103_s1 = inlined_call_operand.hbm [shape: f32[8,128], index: 1, kind: output, shape index: {}]  }
   0x1   :  { %7 = vsyncpa [#allocation4], 0  ;;  %s84_s6 = smov [#allocation2]  }
   0x2   :  { %s14_s7 = sshll.u32 %s84_s6, 4  ;;  %s15_s7 = int_to_ptr.vmem [resolvable:$true] %s14_s7 }
   0x3   :  { %s48_s8 = scalar_lea.vmem %s15_s7, 128  ;;  %p53_p1 = scmp.lt.s32.totalorder %s15_s7, %s15_s7 }
   0x4   :  { %p49_p0 = scmp.ne.s32.totalorder %s15_s7, %s48_s8  ;;  %p54_p2 = scmp.lt.s32.totalorder %s48_s8, %s48_s8 }
   0x6   :  { %p55_p3 = por %p54_p2, %p53_p1 }
   0x8   :  { %p56_p4 = pnand %p55_p3, %p49_p0 }
   0xa   :  { %59 = shalt.err (!%p56_p4)
}
   0xb   :  { %17 = dma.hbm_to_vmem [thread:$0]  %s102_s0, 128, %s15_s7, [#allocation3]  }
   0xc   :  { %80 = dma.done.wait [#allocation3], 128  }
   0xd   :  { %81 = vsyncadd [#allocation3], 4294967168  ;;  %s85_s11 = smov [#allocation5]   ;;  %v21_v0 = vld [vmem:[#allocation2] sm:$0xff] }
   0xe   :  { %s29_s12 = sshll.u32 %s85_s11, 4  ;;  %22 = vst [vmem:[#allocation5] sm:$0xff] %v21_v0  ;;  %s30_s12 = int_to_ptr.vmem [resolvable:$true] %s29_s12 }
   0xf   :  { %s60_s13 = scalar_lea.vmem %s30_s12, 128  ;;  %p65_p6 = scmp.lt.s32.totalorder %s30_s12, %s30_s12 }
  0x10   :  { %p61_p5 = scmp.ne.s32.totalorder %s30_s12, %s60_s13  ;;  %p66_p7 = scmp.lt.s32.totalorder %s60_s13, %s60_s13 }
  0x12   :  { %p67_p8 = por %p66_p7, %p65_p6 }
  0x14   :  { %p68_p9 = pnand %p67_p8, %p61_p5 }
  0x16   :  { %71 = shalt.err (!%p68_p9)
}
  0x17   :  { %32 = dma.vmem_to_hbm [thread:$0]  %s30_s12, 128, %s103_s1, [#allocation4]  }
  0x18   :  { %82 = dma.done.wait [#allocation4], 128  }
  0x19   :  { %83 = vsyncadd [#allocation4], 4294967168 }
  0x1a   :  { %36 = vsyncpa [#allocation3], 1 }
  0x1b   :  { %37 = vsyncpa [#allocation4], 1 }

// kernel: tpu_custom_call.1
= control target key start
LH: loop header
LB: loop body
LE: loop exit
PB: predicated region body
PF: predicated region fallthrough
CT: control target
= control target key end

     0   :  { %12 = vsyncpa [#allocation3], 0  ;;  %s812_s0 = inlined_call_operand.hbm [shape: f32[8,128], index: 0, kind: input, shape index: {}]   ;;  %s813_s1 = inlined_call_operand.hbm [shape: f32[128,128], index: 1, kind: input, shape index: {}]   ;;  %s814_s2 = inlined_call_operand.vmem [shape: f32[1,128], index: 2, kind: input, shape index: {}]   ;;  %s815_s3 = inlined_call_operand.hbm [shape: f32[128,128], index: 3, kind: input, shape index: {}]   ;;  %s816_s4 = inlined_call_operand.vmem [shape: f32[1,128], index: 4, kind: input, shape index: {}]   ;;  %s817_s5 = inlined_call_operand.hbm [shape: f32[128,128], index: 5, kind: input, shape index: {}]   ;;  %s818_s6 = inlined_call_operand.vmem [shape: f32[1,128], index: 6, kind: input, shape index: {}]   ;;  %s819_s7 = inlined_call_operand.hbm [shape: f32[8,128], index: 7, kind: output, shape index: {}]  }
   0x1   :  { %13 = vsyncpa [#allocation6], 0 }
   0x2   :  { %14 = vsyncpa [#allocation9], 0 }
   0x3   :  { %15 = vsyncpa [#allocation4], 0  ;;  %s676_s24 = smov [#allocation5]  }
   0x4   :  { %s31_s25 = sshll.u32 %s676_s24, 4  ;;  %s32_s25 = int_to_ptr.vmem [resolvable:$true] %s31_s25 }
   0x5   :  { %s576_s26 = scalar_lea.vmem %s32_s25, 2048  ;;  %p581_p1 = scmp.lt.s32.totalorder %s32_s25, %s32_s25 }
   0x6   :  { %p577_p0 = scmp.ne.s32.totalorder %s32_s25, %s576_s26  ;;  %p582_p2 = scmp.lt.s32.totalorder %s576_s26, %s576_s26 }
   0x8   :  { %p583_p3 = por %p582_p2, %p581_p1 }
   0xa   :  { %p584_p4 = pnand %p583_p3, %p577_p0 }
   0xc   :  { %587 = shalt.err (!%p584_p4)
}
   0xd   :  { %s677_s27 = smov 128   ;;  %s678_s28 = smov 8  }
   0xe   :  { %37 = dma.hbm_to_vmem [thread:$0]  %s813_s1, 2048, %s32_s25, [#allocation6], %s677_s27, %s677_s27, %s678_s28  }
   0xf   :  { %s679_s8 = smov [#allocation2]   ;;  %s680_s10 = smov [#allocation7]  }
  0x10   :  { %s22_s9 = sshll.u32 %s679_s8, 4  ;;  %s45_s11 = sshll.u32 %s680_s10, 4  ;;  %s23_s9 = int_to_ptr.vmem [resolvable:$true] %s22_s9  ;;  %s46_s11 = int_to_ptr.vmem [resolvable:$true] %s45_s11 }
  0x11   :  { %s596_s12 = scalar_lea.vmem %s23_s9, 128  ;;  %p601_p6 = scmp.lt.s32.totalorder %s23_s9, %s23_s9 }
  0x12   :  { %p597_p5 = scmp.ne.s32.totalorder %s23_s9, %s596_s12  ;;  %p602_p7 = scmp.lt.s32.totalorder %s596_s12, %s596_s12 }
  0x14   :  { %p603_p8 = por %p602_p7, %p601_p6 }
  0x16   :  { %p604_p9 = pnand %p603_p8, %p597_p5 }
  0x18   :  { %607 = shalt.err (!%p604_p9)
}
  0x19   :  { %25 = dma.hbm_to_vmem [thread:$0]  %s812_s0, 128, %s23_s9, [#allocation3]  }
  0x1a   :  { %s616_s15 = scalar_lea.vmem %s46_s11, 2048  ;;  %p621_p11 = scmp.lt.s32.totalorder %s46_s11, %s46_s11 }
  0x1b   :  { %p617_p10 = scmp.ne.s32.totalorder %s46_s11, %s616_s15  ;;  %p622_p12 = scmp.lt.s32.totalorder %s616_s15, %s616_s15 }
  0x1d   :  { %p623_p13 = por %p622_p12, %p621_p11 }
  0x1f   :  { %p624_p0 = pnand %p623_p13, %p617_p10 }
  0x21   :  { %627 = shalt.err (!%p624_p0)
}
  0x22   :  { %51 = dma.hbm_to_vmem [thread:$0]  %s815_s3, 2048, %s46_s11, [#allocation6], %s677_s27, %s677_s27, %s678_s28  }
  0x23   :  { %s681_s17 = smov [#allocation8]  }
  0x24   :  { %s59_s18 = sshll.u32 %s681_s17, 4  ;;  %s60_s18 = int_to_ptr.vmem [resolvable:$true] %s59_s18 }
  0x25   :  { %s636_s19 = scalar_lea.vmem %s60_s18, 2048  ;;  %p641_p2 = scmp.lt.s32.totalorder %s60_s18, %s60_s18 }
  0x26   :  { %p637_p1 = scmp.ne.s32.totalorder %s60_s18, %s636_s19  ;;  %p642_p3 = scmp.lt.s32.totalorder %s636_s19, %s636_s19 }
  0x28   :  { %p643_p4 = por %p642_p3, %p641_p2 }
  0x2a   :  { %p644_p5 = pnand %p643_p4, %p637_p1 }
  0x2c   :  { %647 = shalt.err (!%p644_p5)
}
  0x2d   :  { %65 = dma.hbm_to_vmem [thread:$0]  %s817_s5, 2048, %s60_s18, [#allocation9], %s677_s27, %s677_s27, %s678_s28  }
  0x2e   :  { %668 = dma.done.wait [#allocation3], 128  }
  0x2f   :  { %669 = vsyncadd [#allocation3], 4294967168 }
  0x30   :  { %670 = dma.done.wait [#allocation6], 4096  }
  0x31   :  { %671 = vsyncadd [#allocation6], 4294963200 }
  0x32   :  { %672 = dma.done.wait [#allocation9], 2048  }
  0x33   :  { %673 = vsyncadd [#allocation9], 4294965248  ;;  %v682_v0 = vmov 0.0   ;;  %vm683_vm0 = vmmov 0   ;;  %v96_v1 = vld [vmem:[#allocation5 + $0x78] sm:$0xff]  ;;  %v95_v2 = vld [vmem:[#allocation5 + $0x70] sm:$0xff] }
  0x34   :  { %450 = vmatprep.subr.mxu0 %v682_v0  ;;  %482 = vmatprep.mubr.msk.f32.mxu0 %vm683_vm0, %v682_v0  ;;  %v94_v3 = vld [vmem:[#allocation5 + $0x68] sm:$0xff]  ;;  %v93_v4 = vld [vmem:[#allocation5 + $0x60] sm:$0xff]  ;;  %v92_v5 = vld [vmem:[#allocation5 + $0x58] sm:$0xff]  ;;  %s684_s24 = smov [#allocation10]  }
  0x35   :  { %485 = vmatprep.subr.mxu1 %v682_v0  ;;  %517 = vmatprep.mubr.msk.f32.mxu1 %vm683_vm0, %v682_v0  ;;  %v91_v6 = vld [vmem:[#allocation5 + $0x50] sm:$0xff]  ;;  %v90_v7 = vld [vmem:[#allocation5 + $0x48] sm:$0xff]  ;;  %v89_v8 = vld [vmem:[#allocation5 + $0x40] sm:$0xff] }
  0x36   :  { %451 = vmatpush3.msra.mxu0 %v96_v1  ;;  %v88_v9 = vld [vmem:[#allocation5 + $0x38] sm:$0xff]  ;;  %v87_v10 = vld [vmem:[#allocation5 + $0x30] sm:$0xff]  ;;  %v86_v11 = vld [vmem:[#allocation5 + $0x28] sm:$0xff] }
  0x37   :  { %452 = vmatprep.subr.mxu0 %v682_v0  ;;  %v85_v12 = vld [vmem:[#allocation5 + $0x20] sm:$0xff]  ;;  %v84_v13 = vld [vmem:[#allocation5 + $0x18] sm:$0xff]  ;;  %v83_v14 = vld [vmem:[#allocation5 + $0x10] sm:$0xff] }
  0x38   :  { %453 = vmatpush3.msra.mxu0 %v95_v2  ;;  %v82_v15 = vld [vmem:[#allocation5 + $0x8] sm:$0xff]  ;;  %v81_v16 = vld [vmem:[#allocation5] sm:$0xff]  ;;  %v80_v17 = vld [vmem:[#allocation2] sm:$0xff] }
  0x39   :  { %454 = vmatprep.subr.mxu0 %v682_v0  ;;  %v198_v18 = vld [vmem:[#allocation7 + $0x78] sm:$0xff]  ;;  %v197_v19 = vld [vmem:[#allocation7 + $0x70] sm:$0xff]  ;;  %v196_v20 = vld [vmem:[#allocation7 + $0x68] sm:$0xff] }
  0x3a   :  { %455 = vmatpush3.msra.mxu0 %v94_v3  ;;  %486 = vmatpush3.msra.mxu1 %v198_v18  ;;  %v195_v21 = vld [vmem:[#allocation7 + $0x60] sm:$0xff]  ;;  %v194_v22 = vld [vmem:[#allocation7 + $0x58] sm:$0xff]  ;;  %v193_v23 = vld [vmem:[#allocation7 + $0x50] sm:$0xff] }
  0x3b   :  { %456 = vmatprep.subr.mxu0 %v682_v0  ;;  %487 = vmatprep.subr.mxu1 %v682_v0  ;;  %v192_v24 = vld [vmem:[#allocation7 + $0x48] sm:$0xff]  ;;  %v191_v25 = vld [vmem:[#allocation7 + $0x40] sm:$0xff]  ;;  %v190_v26 = vld [vmem:[#allocation7 + $0x38] sm:$0xff] }
  0x3c   :  { %457 = vmatpush3.msra.mxu0 %v93_v4  ;;  %488 = vmatpush3.msra.mxu1 %v197_v19  ;;  %v189_v27 = vld [vmem:[#allocation7 + $0x30] sm:$0xff]  ;;  %v188_v28 = vld [vmem:[#allocation7 + $0x28] sm:$0xff]  ;;  %v187_v29 = vld [vmem:[#allocation7 + $0x20] sm:$0xff] }
  0x3d   :  { %458 = vmatprep.subr.mxu0 %v682_v0  ;;  %489 = vmatprep.subr.mxu1 %v682_v0  ;;  %v186_v30 = vld [vmem:[#allocation7 + $0x18] sm:$0xff]  ;;  %v185_v31 = vld [vmem:[#allocation7 + $0x10] sm:$0xff]  ;;  %v184_v32 = vld [vmem:[#allocation7 + $0x8] sm:$0xff] }
  0x3e   :  { %459 = vmatpush3.msra.mxu0 %v92_v5  ;;  %490 = vmatpush3.msra.mxu1 %v196_v20  ;;  %v183_v33 = vld [vmem:[#allocation7] sm:$0xff]  ;;  %v396_v34 = vld [vmem:[%s814_s2] ss:$0 sm:$0xff]  ;;  %v299_v48 = vld [vmem:[#allocation8 + $0x70] sm:$0xff] }
  0x3f   :  { %460 = vmatprep.subr.mxu0 %v682_v0  ;;  %491 = vmatprep.subr.mxu1 %v682_v0  ;;  %v300_v47 = vld [vmem:[#allocation8 + $0x78] sm:$0xff]  ;;  %v298_v49 = vld [vmem:[#allocation8 + $0x68] sm:$0xff]  ;;  %v297_v50 = vld [vmem:[#allocation8 + $0x60] sm:$0xff] }
  0x40   :  { %461 = vmatpush3.msra.mxu0 %v91_v6  ;;  %492 = vmatpush3.msra.mxu1 %v195_v21  ;;  %v296_v51 = vld [vmem:[#allocation8 + $0x58] sm:$0xff]  ;;  %v295_v52 = vld [vmem:[#allocation8 + $0x50] sm:$0xff]  ;;  %v294_v53 = vld [vmem:[#allocation8 + $0x48] sm:$0xff] }
  0x41   :  { %462 = vmatprep.subr.mxu0 %v682_v0  ;;  %493 = vmatprep.subr.mxu1 %v682_v0  ;;  %v293_v54 = vld [vmem:[#allocation8 + $0x40] sm:$0xff]  ;;  %v292_v55 = vld [vmem:[#allocation8 + $0x38] sm:$0xff]  ;;  %v291_v56 = vld [vmem:[#allocation8 + $0x30] sm:$0xff] }
  0x42   :  { %463 = vmatpush3.msra.mxu0 %v90_v7  ;;  %494 = vmatpush3.msra.mxu1 %v194_v22  ;;  %v290_v57 = vld [vmem:[#allocation8 + $0x28] sm:$0xff]  ;;  %v289_v58 = vld [vmem:[#allocation8 + $0x20] sm:$0xff]  ;;  %v288_v59 = vld [vmem:[#allocation8 + $0x18] sm:$0xff] }
  0x43   :  { %464 = vmatprep.subr.mxu0 %v682_v0  ;;  %495 = vmatprep.subr.mxu1 %v682_v0  ;;  %v287_v60 = vld [vmem:[#allocation8 + $0x10] sm:$0xff]  ;;  %v286_v61 = vld [vmem:[#allocation8 + $0x8] sm:$0xff]  ;;  %v285_v62 = vld [vmem:[#allocation8] sm:$0xff] }
  0x44   :  { %465 = vmatpush3.msra.mxu0 %v89_v8  ;;  %496 = vmatpush3.msra.mxu1 %v193_v23  ;;  %v397_v63 = vld [vmem:[%s816_s4] ss:$0 sm:$0xff]  ;;  %s385_s4 = sshll.u32 %s684_s24, 4  ;;  %s386_s4 = int_to_ptr.vmem [resolvable:$true] %s385_s4 }
  0x45   :  { %466 = vmatprep.subr.mxu0 %v682_v0  ;;  %497 = vmatprep.subr.mxu1 %v682_v0  ;;  %s648_s25 = scalar_lea.vmem %s386_s4, 128  ;;  %p653_p7 = scmp.lt.s32.totalorder %s386_s4, %s386_s4 }
  0x46   :  { %467 = vmatpush3.msra.mxu0 %v88_v9  ;;  %498 = vmatpush3.msra.mxu1 %v192_v24  ;;  %p649_p6 = scmp.ne.s32.totalorder %s386_s4, %s648_s25  ;;  %p654_p8 = scmp.lt.s32.totalorder %s648_s25, %s648_s25 }
  0x47   :  { %468 = vmatprep.subr.mxu0 %v682_v0  ;;  %499 = vmatprep.subr.mxu1 %v682_v0 }
  0x48   :  { %469 = vmatpush3.msra.mxu0 %v87_v10  ;;  %500 = vmatpush3.msra.mxu1 %v191_v25  ;;  %p655_p9 = por %p654_p8, %p653_p7 }
  0x49   :  { %470 = vmatprep.subr.mxu0 %v682_v0  ;;  %501 = vmatprep.subr.mxu1 %v682_v0 }
  0x4a   :  { %471 = vmatpush3.msra.mxu0 %v86_v11  ;;  %502 = vmatpush3.msra.mxu1 %v190_v26  ;;  %p656_p10 = pnand %p655_p9, %p649_p6 }
  0x4b   :  { %472 = vmatprep.subr.mxu0 %v682_v0  ;;  %503 = vmatprep.subr.mxu1 %v682_v0 }
  0x4c   :  { %473 = vmatpush3.msra.mxu0 %v85_v12  ;;  %504 = vmatpush3.msra.mxu1 %v189_v27 }
  0x4d   :  { %474 = vmatprep.subr.mxu0 %v682_v0  ;;  %505 = vmatprep.subr.mxu1 %v682_v0 }
  0x4e   :  { %475 = vmatpush3.msra.mxu0 %v84_v13  ;;  %506 = vmatpush3.msra.mxu1 %v188_v28 }
  0x4f   :  { %476 = vmatprep.subr.mxu0 %v682_v0  ;;  %507 = vmatprep.subr.mxu1 %v682_v0 }
  0x50   :  { %477 = vmatpush3.msra.mxu0 %v83_v14  ;;  %508 = vmatpush3.msra.mxu1 %v187_v29 }
  0x51   :  { %478 = vmatprep.subr.mxu0 %v682_v0  ;;  %509 = vmatprep.subr.mxu1 %v682_v0 }
  0x52   :  { %479 = vmatpush3.msra.mxu0 %v82_v15  ;;  %510 = vmatpush3.msra.mxu1 %v186_v30 }
  0x53   :  { %480 = vmatprep.subr.mxu0 %v682_v0  ;;  %511 = vmatprep.subr.mxu1 %v682_v0 }
  0x54   :  { %481 = vmatpush3.msra.mxu0 %v81_v16  ;;  %512 = vmatpush3.msra.mxu1 %v185_v31 }
  0x55   :  { %483 = vmatmul.mubr.f32.vlgmr.msra.gmra.mxu0 %v80_v17  ;;  %520 = vmatprep.subr.mxu0 %v682_v0 }
  0x56   :  { %552 = vmatprep.mubr.msk.f32.mxu0 %vm683_vm0, %v682_v0  ;;  %513 = vmatprep.subr.mxu1 %v682_v0 }
  0x57   :  { %514 = vmatpush3.msra.mxu1 %v184_v32  ;;  %521 = vmatpush3.msra.mxu0 %v300_v47 }
  0x58   :  { %515 = vmatprep.subr.mxu1 %v682_v0  ;;  %522 = vmatprep.subr.mxu0 %v682_v0 }
  0x59   :  { %516 = vmatpush3.msra.mxu1 %v183_v33  ;;  %523 = vmatpush3.msra.mxu0 %v299_v48 }
  0x5a   :  { %524 = vmatprep.subr.mxu0 %v682_v0 }
  0x5b   :  { %525 = vmatpush3.msra.mxu0 %v298_v49 }
  0x5c   :  { %526 = vmatprep.subr.mxu0 %v682_v0 }
  0x5d   :  { %527 = vmatpush3.msra.mxu0 %v297_v50 }
  0x5e   :  { %528 = vmatprep.subr.mxu0 %v682_v0 }
  0x5f   :  { %529 = vmatpush3.msra.mxu0 %v296_v51 }
  0x60   :  { %530 = vmatprep.subr.mxu0 %v682_v0 }
  0x61   :  { %531 = vmatpush3.msra.mxu0 %v295_v52 }
  0x62   :  { %532 = vmatprep.subr.mxu0 %v682_v0 }
  0x63   :  { %533 = vmatpush3.msra.mxu0 %v294_v53 }
  0x64   :  { %534 = vmatprep.subr.mxu0 %v682_v0 }
  0x65   :  { %535 = vmatpush3.msra.mxu0 %v293_v54 }
  0x66   :  { %536 = vmatprep.subr.mxu0 %v682_v0 }
  0x67   :  { %537 = vmatpush3.msra.mxu0 %v292_v55 }
  0x68   :  { %538 = vmatprep.subr.mxu0 %v682_v0 }
  0x69   :  { %539 = vmatpush3.msra.mxu0 %v291_v56 }
  0x6a   :  { %540 = vmatprep.subr.mxu0 %v682_v0 }
  0x6b   :  { %541 = vmatpush3.msra.mxu0 %v290_v57 }
  0x6c   :  { %542 = vmatprep.subr.mxu0 %v682_v0 }
  0x6d   :  { %543 = vmatpush3.msra.mxu0 %v289_v58 }
  0x6e   :  { %544 = vmatprep.subr.mxu0 %v682_v0 }
  0x6f   :  { %545 = vmatpush3.msra.mxu0 %v288_v59 }
  0x70   :  { %546 = vmatprep.subr.mxu0 %v682_v0 }
  0x71   :  { %547 = vmatpush3.msra.mxu0 %v287_v60 }
  0x72   :  { %548 = vmatprep.subr.mxu0 %v682_v0 }
  0x73   :  { %549 = vmatpush3.msra.mxu0 %v286_v61 }
  0x74   :  { %550 = vmatprep.subr.mxu0 %v682_v0  ;;  %v398_v0 = vld [vmem:[%s818_s6] ss:$0 sm:$0xff] }
  0x75   :  { %551 = vmatpush3.msra.mxu0 %v285_v62 }
 0x115   :  { %v170_v35 = vpop.f32.mrf.mxu0 }
 0x116   :  { %v171_v36 = vadd.f32 %v396_v34, %v170_v35 }
 0x117   :  { %v484_v37 = vpop.f32.mrf.mxu0 }
 0x118   :  { %v174_v38 = vmul.f32 %v171_v36, %v171_v36 }
 0x11a   :  { %v175_v39 = vmul.f32 %v174_v38, %v171_v36 }
 0x11c   :  { %v176_v40 = vmul.f32 0.044715, %v175_v39 }
 0x11e   :  { %v177_v41 = vadd.f32 %v176_v40, %v171_v36 }
 0x120   :  { %v178_v42 = vmul.f32 0.7978846, %v177_v41 }
 0x122   :  { %564 = vtanh.f32 %v178_v42 }
 0x12f   :  { %v565_v43 = vpop.eup %564 }
 0x130   :  { %v180_v44 = vadd.f32 1.0, %v565_v43 }
 0x132   :  { %v181_v45 = vmul.f32 0.5, %v180_v44 }
 0x134   :  { %v182_v46 = vmul.f32 %v181_v45, %v171_v36 }
 0x136   :  { %518 = vmatmul.mubr.f32.vlgmr.msra.gmra.mxu1 %v182_v46 }
 0x1f6   :  { %v272_v1 = vpop.f32.mrf.mxu1 }
 0x1f7   :  { %v273_v2 = vadd.f32 %v397_v63, %v272_v1 }
 0x1f8   :  { %v519_v3 = vpop.f32.mrf.mxu1 }
 0x1f9   :  { %v276_v4 = vmul.f32 %v273_v2, %v273_v2 }
 0x1fb   :  { %v277_v5 = vmul.f32 %v276_v4, %v273_v2 }
 0x1fd   :  { %v278_v6 = vmul.f32 0.044715, %v277_v5 }
 0x1ff   :  { %v279_v7 = vadd.f32 %v278_v6, %v273_v2 }
 0x201   :  { %v280_v8 = vmul.f32 0.7978846, %v279_v7 }
 0x203   :  { %566 = vtanh.f32 %v280_v8 }
 0x210   :  { %v567_v9 = vpop.eup %566 }
 0x211   :  { %v282_v10 = vadd.f32 1.0, %v567_v9 }
 0x213   :  { %v283_v11 = vmul.f32 0.5, %v282_v10 }
 0x215   :  { %v284_v12 = vmul.f32 %v283_v11, %v273_v2 }
 0x217   :  { %553 = vmatmul.mubr.f32.vlgmr.msra.gmra.mxu0 %v284_v12 }
 0x2d7   :  { %v374_v13 = vpop.f32.mrf.mxu0 }
 0x2d8   :  { %v375_v14 = vadd.f32 %v398_v0, %v374_v13 }
 0x2d9   :  { %v554_v15 = vpop.f32.mrf.mxu0 }
 0x2da   :  { %378 = vst [vmem:[#allocation10] sm:$0xff] %v375_v14 }
 0x2db   :  { %659 = shalt.err (!%p656_p10)
}
 0x2dc   :  { %388 = dma.vmem_to_hbm [thread:$0]  %s386_s4, 128, %s819_s7, [#allocation4]  }
 0x2dd   :  { %674 = dma.done.wait [#allocation4], 128  }
 0x2de   :  { %675 = vsyncadd [#allocation4], 4294967168 }
 0x2df   :  { %392 = vsyncpa [#allocation3], 1 }
 0x2e0   :  { %393 = vsyncpa [#allocation6], 1 }
 0x2e1   :  { %394 = vsyncpa [#allocation9], 1 }
 0x2e2   :  { %395 = vsyncpa [#allocation4], 1 }

</bundles_post_ra>
